<compile_context>
chip_gen: v7x
topology: tpu7x:2x2x1
jax: 0.10.0
libtpu: 0.0.40
codegen_flags: <defaults>
</compile_context>

<pallas_src>
import functools

import jax
import jax.numpy as jnp
from jax import lax
from jax.experimental import pallas as pl
from jax.experimental.pallas import tpu as pltpu

_SQRT_2_INV = 0.7071067811865476
_LANE = 128  # lane-dense padding of the hidden axis only (v5e-native MXU width)


def _round_up(v, m):
    return ((v + m - 1) // m) * m


def _gelu_exact(y):
    # Exact (erf) GELU, matching torch.nn.GELU() default.
    # (If a post-fix profile ever shows the VALU slot saturating on v6e/v7x,
    #  jax.nn.gelu(..., approximate=True) moves the work to the idle EUP slot
    #  at the cost of a small numerics change.)
    return 0.5 * y * (1.0 + lax.erf(y * _SQRT_2_INV))


def _ffn_body(x, w1_ref, b1_ref, w2_ref, b2_ref, out_dtype):
    # fn1 -> GELU -> (dropout = identity in eval) -> fn2, f32 accumulation on MXU.
    h = jnp.dot(x.astype(w1_ref.dtype), w1_ref[...],
                preferred_element_type=jnp.float32) + b1_ref[...]
    h = _gelu_exact(h)
    # TODO(synk): Dropout(p) is identity in eval mode; a training-mode variant
    # would use pltpu.prng_seed / pltpu.prng_random_bits (no PyTorch RNG parity).
    y = jnp.dot(h.astype(w2_ref.dtype), w2_ref[...],
                preferred_element_type=jnp.float32) + b2_ref[...]
    return y.astype(out_dtype)


def _ffn_kernel(x_ref, w1_ref, b1_ref, w2_ref, b2_ref, o_ref):
    o_ref[...] = _ffn_body(x_ref[...], w1_ref, b1_ref, w2_ref, b2_ref, o_ref.dtype)


def _ffn_kernel_masked(mask_ref, x_ref, w1_ref, b1_ref, w2_ref, b2_ref, o_ref):
    x = x_ref[...]                                   # [tm, V]
    m = mask_ref[...]                                # [tm, 1] float
    # Exact masked_fill(mask.float() == 0, 0) semantics (handles non-0/1 masks
    # and zeroes NaN rows, unlike a plain multiply).
    x = jnp.where(m == 0.0, jnp.zeros_like(x), x)
    o_ref[...] = _ffn_body(x, w1_ref, b1_ref, w2_ref, b2_ref, o_ref.dtype)


def prepare_params(w1, b1, w2, b2, lane=_LANE, compute_dtype=jnp.bfloat16):
    """One-time parameter prep (outside the per-call hot path).

    w1: [inner_dim, view_num], b1: [inner_dim]  (fn1, PyTorch nn.Linear layout)
    w2: [view_num, inner_dim], b2: [view_num]   (fn2)

    Returns pre-transposed params with ONLY the hidden axis zero-padded to a
    lane-dense multiple of 128 (the V axis stays un-padded so activations are
    streamed in their natural layout):
      w1p: [V, Hp]  b1p: [1, Hp]  w2p: [Hp, V]  b2p: [1, V]
    Weights are stored in `compute_dtype` (bf16 by default: halves weight/x
    MXU bytes; biases stay f32 and accumulation is f32 in-kernel).
    """
    H, V = w1.shape
    assert w2.shape == (V, H) and b1.shape == (H,) and b2.shape == (V,)
    Hp = _round_up(H, lane)
    w1p = jnp.zeros((V, Hp), compute_dtype).at[:, :H].set(w1.T.astype(compute_dtype))
    b1p = jnp.zeros((1, Hp), jnp.float32).at[:, :H].set(b1.astype(jnp.float32)[None, :])
    w2p = jnp.zeros((Hp, V), compute_dtype).at[:H, :].set(w2.T.astype(compute_dtype))
    b2p = b2.astype(jnp.float32)[None, :]
    return w1p, b1p, w2p, b2p


@functools.partial(jax.jit, static_argnames=("tm",))
def view_feedforward(x, mask, w1p, b1p, w2p, b2p, *, tm=1024):
    """x: [..., view_num]; mask: [...] (same leading dims) or None.
    w1p/b1p/w2p/b2p: outputs of prepare_params()."""
    V = x.shape[-1]
    Vw, Hp = w1p.shape
    assert Vw == V and w2p.shape == (Hp, V), (w1p.shape, w2p.shape, V)
    assert b1p.shape == (1, Hp) and b2p.shape == (1, V)
    lead = x.shape[:-1]

    x2 = x.reshape(-1, V)                 # natural [M, V] layout, no padding
    M = x2.shape[0]

    # Row tile: multiple of 8 (sublane constraint), clamped for small M, and
    # halved once if the grid would have <2 steps so the "parallel" axis can
    # shard across both v7x TensorCores.
    tm = max(8, _round_up(int(tm), 8))
    tm = min(tm, _round_up(M, 8))
    if pl.cdiv(M, tm) < 2 and tm > 8:
        tm = max(8, _round_up(pl.cdiv(tm, 2), 8))
    grid = (pl.cdiv(M, tm),)              # partial last block handled by Pallas

    if mask is not None:
        assert mask.shape == lead, (mask.shape, lead)
        mask2 = mask.reshape(-1, 1).astype(jnp.float32)   # [M, 1]

    # ---- Generation-aware VMEM budget -------------------------------------
    itemsize = jnp.dtype(x.dtype).itemsize
    w_item = jnp.dtype(w1p.dtype).itemsize
    w_bytes = (w1p.size + w2p.size) * w_item + (b1p.size + b2p.size) * 4
    act_bytes = 2 * (2 * tm * V * itemsize)              # x + out, double-buffered
    mask_bytes = (2 * tm * 4) if mask is not None else 0
    # In-kernel f32 intermediates: h [tm, Hp] plus GELU temps (~4x), y acc.
    interm_bytes = 4 * tm * Hp * 4 + 2 * tm * V * 4
    step_bytes = act_bytes + mask_bytes + 2 * w_bytes + interm_bytes
    try:
        vmem_cap = int(pltpu.get_tpu_info().vmem_capacity_bytes)
    except Exception:
        vmem_cap = 64 * 1024 * 1024                      # v7x per-TC worst case
    budget = int(vmem_cap * 3 // 4)
    assert step_bytes <= budget, (
        f"per-step VMEM footprint {step_bytes} exceeds budget {budget}; "
        "lower tm or use a (tm,tn,tk)-tiled accumulator variant")
    vmem_limit = int(min(max(2 * step_bytes, 32 * 1024 * 1024), budget))
    # ------------------------------------------------------------------------

    x_spec = pl.BlockSpec((tm, V), lambda i: (i, 0))
    o_spec = pl.BlockSpec((tm, V), lambda i: (i, 0))
    # Constant-index weight/bias specs (fetched once, stay VMEM-resident).
    w1_spec = pl.BlockSpec((V, Hp), lambda i: (0, 0))
    b1_spec = pl.BlockSpec((1, Hp), lambda i: (0, 0))
    w2_spec = pl.BlockSpec((Hp, V), lambda i: (0, 0))
    b2_spec = pl.BlockSpec((1, V), lambda i: (0, 0))

    if mask is not None:
        kernel = _ffn_kernel_masked
        in_specs = [pl.BlockSpec((tm, 1), lambda i: (i, 0)),
                    x_spec, w1_spec, b1_spec, w2_spec, b2_spec]
        operands = (mask2, x2, w1p, b1p, w2p, b2p)
    else:
        kernel = _ffn_kernel
        in_specs = [x_spec, w1_spec, b1_spec, w2_spec, b2_spec]
        operands = (x2, w1p, b1p, w2p, b2p)

    cost = pl.CostEstimate(
        flops=4 * M * V * Hp,                            # two matmuls
        transcendentals=M * Hp,                          # erf in the GELU
        bytes_accessed=(M * V * itemsize * 2             # x in + out
                        + (0 if mask is None else M * 4)
                        + w_bytes),
    )

    out = pl.pallas_call(
        kernel,
        out_shape=jax.ShapeDtypeStruct((M, V), x.dtype),
        grid_spec=pltpu.PrefetchScalarGridSpec(
            num_scalar_prefetch=0,
            grid=grid,
            in_specs=in_specs,
            out_specs=o_spec,
        ),
        compiler_params=pltpu.CompilerParams(
            dimension_semantics=("parallel",),           # row tiles shard over v7x's 2 TCs
            vmem_limit_bytes=vmem_limit,
        ),
        cost_estimate=cost,
    )(*operands)

    return out.reshape(*lead, V)


def view_feedforward_reference(x, mask, w1, b1, w2, b2):
    if mask is not None:
        x = jnp.where(mask[..., None] == 0, 0.0, x)
    h = jnp.einsum("...v,hv->...h", x, w1) + b1
    h = 0.5 * h * (1.0 + lax.erf(h / jnp.sqrt(2.0)))
    return jnp.einsum("...h,vh->...v", h, w2) + b2


if __name__ == "__main__":
    # Small shapes consistent with the module: batch=2, seq=8, view_num=16, inner_dim=32
    batch, seq = 2, 8
    view_num, inner_dim = 16, 32

    key = jax.random.PRNGKey(0)
    kx, km, kw1, kb1, kw2, kb2 = jax.random.split(key, 6)

    x = jax.random.normal(kx, (batch, seq, view_num), dtype=jnp.float32)
    mask = (jax.random.uniform(km, (batch, seq)) > 0.3).astype(jnp.float32)

    # Deterministic nn.Linear-style init (uniform +/- 1/sqrt(fan_in))
    bnd1 = 1.0 / (view_num ** 0.5)
    w1 = jax.random.uniform(kw1, (inner_dim, view_num), jnp.float32, -bnd1, bnd1)
    b1 = jax.random.uniform(kb1, (inner_dim,), jnp.float32, -bnd1, bnd1)
    bnd2 = 1.0 / (inner_dim ** 0.5)
    w2 = jax.random.uniform(kw2, (view_num, inner_dim), jnp.float32, -bnd2, bnd2)
    b2 = jax.random.uniform(kb2, (view_num,), jnp.float32, -bnd2, bnd2)

    ref = view_feedforward_reference(x, mask, w1, b1, w2, b2)
    ref_nm = view_feedforward_reference(x, None, w1, b1, w2, b2)

    # --- f32 parameter path (exact-parity check) ---------------------------
    pf32 = prepare_params(w1, b1, w2, b2, compute_dtype=jnp.float32)
    out = jax.block_until_ready(view_feedforward(x, mask, *pf32))
    assert out.shape == (batch, seq, view_num), out.shape
    assert jnp.allclose(out, ref, atol=1e-5, rtol=1e-5), float(jnp.max(jnp.abs(out - ref)))

    out_nm = jax.block_until_ready(view_feedforward(x, None, *pf32))
    assert jnp.allclose(out_nm, ref_nm, atol=1e-5, rtol=1e-5), float(
        jnp.max(jnp.abs(out_nm - ref_nm)))

    # --- default bf16 parameter path (memory-bound win, esp. v5e) ----------
    pbf16 = prepare_params(w1, b1, w2, b2)        # compute_dtype=bf16 default
    out_bf = jax.block_until_ready(view_feedforward(x, mask, *pbf16))
    assert out_bf.shape == (batch, seq, view_num), out_bf.shape
    # Loose tolerance accounts for bf16 weight/activation rounding.
    assert jnp.allclose(out_bf, ref, atol=1e-1, rtol=1e-1), float(
        jnp.max(jnp.abs(out_bf - ref)))

    print("KERNEL_OK")
</pallas_src>

<mosaic_0001>
module attributes {stable_mosaic.version = 11 : i64} {
  func.func @_ffn_kernel_masked(%arg0: i32, %arg1: memref<8x1xf32, #tpu.memory_space<vmem>>, %arg2: memref<8x16xf32, #tpu.memory_space<vmem>>, %arg3: memref<16x128xf32, #tpu.memory_space<vmem>>, %arg4: memref<1x128xf32, #tpu.memory_space<vmem>>, %arg5: memref<128x16xf32, #tpu.memory_space<vmem>>, %arg6: memref<1x16xf32, #tpu.memory_space<vmem>>, %arg7: memref<8x16xf32, #tpu.memory_space<vmem>>) attributes {dimension_semantics = [#tpu.dimension_semantics<parallel>], iteration_bounds = array<i64: 2>, scalar_prefetch = 0 : i64, scratch_operands = 0 : i64, tpu.core_type = #tpu.core_type<tc>, window_params = [{transform_indices = @transform_0, window_bounds = array<i64: 8, 1>}, {transform_indices = @transform_1, window_bounds = array<i64: 8, 16>}, {pipeline_mode = #tpu.pipeline_mode<synchronous>, transform_indices = @transform_2, window_bounds = array<i64: 16, 128>}, {pipeline_mode = #tpu.pipeline_mode<synchronous>, transform_indices = @transform_3, window_bounds = array<i64: 1, 128>}, {pipeline_mode = #tpu.pipeline_mode<synchronous>, transform_indices = @transform_4, window_bounds = array<i64: 128, 16>}, {pipeline_mode = #tpu.pipeline_mode<synchronous>, transform_indices = @transform_5, window_bounds = array<i64: 1, 16>}, {transform_indices = @transform_6, window_bounds = array<i64: 8, 16>}]} {
    %c0 = arith.constant 0 : index
    %c0_0 = arith.constant 0 : index
    %0 = vector.load %arg2[%c0, %c0_0] : memref<8x16xf32, #tpu.memory_space<vmem>>, vector<8x16xf32>
    %c0_1 = arith.constant 0 : index
    %c0_2 = arith.constant 0 : index
    %1 = vector.load %arg1[%c0_1, %c0_2] : memref<8x1xf32, #tpu.memory_space<vmem>>, vector<8x1xf32>
    %cst = arith.constant 0.000000e+00 : f32
    %2 = vector.broadcast %cst : f32 to vector<8x1xf32>
    %3 = arith.cmpf oeq, %1, %2 : vector<8x1xf32>
    %cst_3 = arith.constant 0.000000e+00 : f32
    %4 = vector.broadcast %cst_3 : f32 to vector<8x16xf32>
    %5 = vector.shape_cast %3 : vector<8x1xi1> to vector<8x1xi1>
    %6 = vector.broadcast %5 : vector<8x1xi1> to vector<8x16xi1>
    %7 = arith.select %6, %4, %0 : vector<8x16xi1>, vector<8x16xf32>
    %c0_4 = arith.constant 0 : index
    %c0_5 = arith.constant 0 : index
    %8 = vector.load %arg3[%c0_4, %c0_5] : memref<16x128xf32, #tpu.memory_space<vmem>>, vector<16x128xf32>
    %cst_6 = arith.constant dense<0.000000e+00> : vector<8x128xf32>
    %9 = tpu.matmul %7, %8, %cst_6 {dimension_numbers = #tpu.dot_dimension_numbers<[1], [0], [0], [1], [0, 0, 1, 1], [], []>} : vector<8x16xf32>, vector<16x128xf32>, vector<8x128xf32> -> vector<8x128xf32>
    %c0_7 = arith.constant 0 : index
    %c0_8 = arith.constant 0 : index
    %10 = vector.load %arg4[%c0_7, %c0_8] : memref<1x128xf32, #tpu.memory_space<vmem>>, vector<1x128xf32>
    %11 = vector.broadcast %10 : vector<1x128xf32> to vector<8x128xf32>
    %12 = arith.addf %9, %11 : vector<8x128xf32>
    %cst_9 = arith.constant 5.000000e-01 : f32
    %13 = vector.broadcast %cst_9 : f32 to vector<8x128xf32>
    %14 = arith.mulf %13, %12 : vector<8x128xf32>
    %cst_10 = arith.constant 0.707106769 : f32
    %15 = vector.broadcast %cst_10 : f32 to vector<8x128xf32>
    %16 = arith.mulf %12, %15 : vector<8x128xf32>
    %17 = math.erf %16 : vector<8x128xf32>
    %cst_11 = arith.constant 1.000000e+00 : f32
    %18 = vector.broadcast %cst_11 : f32 to vector<8x128xf32>
    %19 = arith.addf %18, %17 : vector<8x128xf32>
    %20 = arith.mulf %14, %19 : vector<8x128xf32>
    %c0_12 = arith.constant 0 : index
    %c0_13 = arith.constant 0 : index
    %21 = vector.load %arg5[%c0_12, %c0_13] : memref<128x16xf32, #tpu.memory_space<vmem>>, vector<128x16xf32>
    %cst_14 = arith.constant dense<0.000000e+00> : vector<8x16xf32>
    %22 = tpu.matmul %20, %21, %cst_14 {dimension_numbers = #tpu.dot_dimension_numbers<[1], [0], [0], [1], [0, 0, 1, 1], [], []>} : vector<8x128xf32>, vector<128x16xf32>, vector<8x16xf32> -> vector<8x16xf32>
    %c0_15 = arith.constant 0 : index
    %c0_16 = arith.constant 0 : index
    %23 = vector.load %arg6[%c0_15, %c0_16] : memref<1x16xf32, #tpu.memory_space<vmem>>, vector<1x16xf32>
    %24 = vector.broadcast %23 : vector<1x16xf32> to vector<8x16xf32>
    %25 = arith.addf %22, %24 : vector<8x16xf32>
    %c0_17 = arith.constant 0 : index
    %c0_18 = arith.constant 0 : index
    %26 = vector.load %arg7[%c0_17, %c0_18] : memref<8x16xf32, #tpu.memory_space<vmem>>, vector<8x16xf32>
    tpu.vector_store %arg7[%c0_17, %c0_18], %25 {strides = array<i32>} : memref<8x16xf32, #tpu.memory_space<vmem>>, vector<8x16xf32>,
    return
  }
  func.func @transform_0(%arg0: i32) -> (i32, i32) {
    %c0_i32 = arith.constant 0 : i32
    %c0_i32_0 = arith.constant 0 : i32
    return %arg0, %c0_i32 : i32, i32
  }
  func.func @transform_1(%arg0: i32) -> (i32, i32) {
    %c0_i32 = arith.constant 0 : i32
    %c0_i32_0 = arith.constant 0 : i32
    return %arg0, %c0_i32 : i32, i32
  }
  func.func @transform_2(%arg0: i32) -> (i32, i32) {
    %c0_i32 = arith.constant 0 : i32
    %c0_i32_0 = arith.constant 0 : i32
    %c0_i32_1 = arith.constant 0 : i32
    return %c0_i32, %c0_i32_0 : i32, i32
  }
  func.func @transform_3(%arg0: i32) -> (i32, i32) {
    %c0_i32 = arith.constant 0 : i32
    %c0_i32_0 = arith.constant 0 : i32
    %c0_i32_1 = arith.constant 0 : i32
    return %c0_i32, %c0_i32_0 : i32, i32
  }
  func.func @transform_4(%arg0: i32) -> (i32, i32) {
    %c0_i32 = arith.constant 0 : i32
    %c0_i32_0 = arith.constant 0 : i32
    %c0_i32_1 = arith.constant 0 : i32
    return %c0_i32, %c0_i32_0 : i32, i32
  }
  func.func @transform_5(%arg0: i32) -> (i32, i32) {
    %c0_i32 = arith.constant 0 : i32
    %c0_i32_0 = arith.constant 0 : i32
    %c0_i32_1 = arith.constant 0 : i32
    return %c0_i32, %c0_i32_0 : i32, i32
  }
  func.func @transform_6(%arg0: i32) -> (i32, i32) {
    %c0_i32 = arith.constant 0 : i32
    %c0_i32_0 = arith.constant 0 : i32
    return %arg0, %c0_i32 : i32, i32
  }
}

</mosaic_0001>

<bundles_post_ra>
// kernel: view_feedforward.1
= control target key start
LH: loop header
LB: loop body
LE: loop exit
PB: predicated region body
PF: predicated region fallthrough
CT: control target
= control target key end

     0   :  { %11 = vsyncpa [#allocation3], 0  ;;  %s961_s0 = inlined_call_operand.vmem [shape: f32[16,1], index: 0, kind: input, shape index: {}]   ;;  %s962_s1 = inlined_call_operand.vmem [shape: f32[16,16], index: 1, kind: input, shape index: {}]   ;;  %s963_s2 = inlined_call_operand.vmem [shape: f32[16,128], index: 2, kind: input, shape index: {}]   ;;  %s964_s3 = inlined_call_operand.vmem [shape: f32[1,128], index: 3, kind: input, shape index: {}]   ;;  %s965_s4 = inlined_call_operand.vmem [shape: f32[128,16], index: 4, kind: input, shape index: {}]   ;;  %s966_s5 = inlined_call_operand.vmem [shape: f32[1,16], index: 5, kind: input, shape index: {}]   ;;  %s967_s6 = inlined_call_operand.hbm [shape: f32[16,16], index: 6, kind: output, shape index: {}]  }
   0x1   :  { %13 = vsyncpa [#allocation3 + $0x1], 0  ;;  %s793_s21 = smov 0   ;;  %s795_s22 = smov 0  }
   0x2   :  { %s797_s23 = smov 0   ;;  %s799_s24 = smov 0  }
   0x3 LB: > { %s814_s25 = sadd.s32 4294967295, %s751_s24   ;;  %s540_s26 = sadd.s32 4294967294, %s751_s24   ;;  %s751_s24 = sphi %s799_s24, %s973_s24   ;;  %s747_s23 = sphi %s797_s23, %s972_s23   ;;  %s743_s22 = sphi %s795_s22, %s971_s22   ;;  %s739_s21 = sphi %s793_s21, %s970_s21  }
   0x4   : > { %s818_s27 = sadd.s32 1, %s751_s24   ;;  %s162_s28 = sadd.s32 1, %s747_s23 }
   0x5   : > { %s159_s29 = ssub.s32 %s751_s24, %s818_s27  ;;  %p172_p0 = scmp.ne.s32.totalorder %s747_s23, %s743_s22 }
   0x6   : > { %p160_p1 = scmp.eq.s32.totalorder %s159_s29, 0  ;;  %p173_p2 = scmp.eq.s32.totalorder %s814_s25, 1 }
   0x7   : > { %p178_p3 = scmp.ne.s32.totalorder %s743_s22, %s739_s21  ;;  %p179_p4 = scmp.eq.s32.totalorder %s540_s26, 1 }
   0x8   : > { %s829_s30 = scalar_select %p160_p1, %s747_s23, %s162_s28  }
   0x9   : > { %p831_p5 = por %p173_p2, %p172_p0  ;;  %p835_p6 = por %p179_p4, %p178_p3 }
   0xa   : > { %p543_p7 = scmp.ge.s32.totalorder %s751_s24, 1  ;;  %p223_p8 = scmp.lt.s32.totalorder %s751_s24, 3 }
   0xc   : > { %p224_p9 = pnand %p543_p7, %p223_p8 }
   0xd   : > { %p256_p10 = scmp.lt.s32.totalorder (!%p224_p9), %s814_s25, 1  ;;  %v273_v0 = vld [vmem:[%s963_s2] sm:$0xff] (!%p224_p9)  ;;  %v274_v1 = vld [vmem:[%s963_s2 + $0x8] sm:$0xff] (!%p224_p9)  ;;  %v753_v2 = vmov (!%p224_p9), 0   ;;  %v754_v3 = vmov (!%p224_p9), 0.0|0.0   ;;  %vm755_vm1 = vmmov (!%p224_p9), 0  }
   0xe   : > { %227 = sbr.rel (%p224_p9) target bundleno = 617 (0x269), region = 44  ;;  %686 = vset.pattern.permute.xlu0 (!%p224_p9), %v753_v2  ;;  %616 = vmatprep.subr.bf16.mxu0 (!%p224_p9), %v754_v3  ;;  %v617_v4 = vpack.c.bf16 (!%p224_p9), %v274_v1, %v273_v0  ;;  %v756_v7 = vmov (!%p224_p9), 0.0   ;;  %v361_v8 = vld [vmem:[%s965_s4] sm:$0xff] (!%p224_p9)  ;;  %v362_v9 = vld [vmem:[%s965_s4 + $0x8] sm:$0xff] (!%p224_p9)  ;;  %v363_v10 = vld [vmem:[%s965_s4 + $0x10] sm:$0xff] (!%p224_p9)  ;;  %vm282_vm2 = vcmask (!%p224_p9), 130048  }
   0xf   : > { %619 = vmatprep.subr.bf16.mxu1 (!%p224_p9), %v754_v3  ;;  %578 = vmatprep.mubr.msk.f32.mxu0 (!%p224_p9), %vm755_vm1, %v756_v7  ;;  %v620_v11 = vpack.c.bf16 (!%p224_p9), %v362_v9, %v361_v8  ;;  %v364_v12 = vld [vmem:[%s965_s4 + $0x18] sm:$0xff] (!%p224_p9)  ;;  %v365_v14 = vld [vmem:[%s965_s4 + $0x20] sm:$0xff] (!%p224_p9)  ;;  %v366_v15 = vld [vmem:[%s965_s4 + $0x28] sm:$0xff] (!%p224_p9)  ;;  %s253_s10 = sand.u32 (!%p224_p9), 1, %s743_s22   ;;  %s551_s15 = sshll.u32 (!%p224_p9), %s814_s25, 7 }
  0x10   : > { %618 = vmatpush3.bf16.msra.mxu0 (!%p224_p9), %v617_v4  ;;  %613 = vmatprep.mubr.msk.f32.mxu1 (!%p224_p9), %vm755_vm1, %v756_v7  ;;  %v623_v13 = vpack.c.bf16 (!%p224_p9), %v364_v12, %v363_v10  ;;  %v626_v16 = vpack.c.bf16 (!%p224_p9), %v366_v15, %v365_v14  ;;  %v367_v20 = vld [vmem:[%s965_s4 + $0x30] sm:$0xff] (!%p224_p9)  ;;  %v368_v21 = vld [vmem:[%s965_s4 + $0x38] sm:$0xff] (!%p224_p9)  ;;  %v369_v23 = vld [vmem:[%s965_s4 + $0x40] sm:$0xff] (!%p224_p9)  ;;  %s544_s11 = sshll.u32 (!%p224_p9), %s253_s10, 3  ;;  %s918_s20 = scalar_lea.hbm (!%p224_p9), %s967_s6, %s551_s15 }
  0x11   : > { %621 = vmatpush3.bf16.msra.mxu1 (!%p224_p9), %v620_v11  ;;  %v629_v22 = vpack.c.bf16 (!%p224_p9), %v368_v21, %v367_v20  ;;  %v370_v24 = vld [vmem:[%s965_s4 + $0x48] sm:$0xff] (!%p224_p9)  ;;  %v371_v26 = vld [vmem:[%s965_s4 + $0x50] sm:$0xff] (!%p224_p9)  ;;  %v372_v27 = vld [vmem:[%s965_s4 + $0x58] sm:$0xff] (!%p224_p9)  ;;  %s255_s16 = scalar_lea.vmem (!%p224_p9), [#allocation2], %s544_s11  ;;  %s456_s26 = scalar_lea.sflag (!%p224_p9), [#allocation3], %s253_s10 }
  0x12   : > { %622 = vmatprep.subr.bf16.mxu1 (!%p224_p9), %v754_v3  ;;  %v632_v25 = vpack.c.bf16 (!%p224_p9), %v370_v24, %v369_v23  ;;  %v635_v28 = vpack.c.bf16 (!%p224_p9), %v372_v27, %v371_v26  ;;  %v373_v29 = vld [vmem:[%s965_s4 + $0x60] sm:$0xff] (!%p224_p9)  ;;  %v374_v30 = vld [vmem:[%s965_s4 + $0x68] sm:$0xff] (!%p224_p9)  ;;  %v375_v32 = vld [vmem:[%s965_s4 + $0x70] sm:$0xff] (!%p224_p9) }
  0x13   : > { %v638_v31 = vpack.c.bf16 (!%p224_p9), %v374_v30, %v373_v29  ;;  %v376_v33 = vld [vmem:[%s965_s4 + $0x78] sm:$0xff] (!%p224_p9)  ;;  %v547_v35 = vld [vmem:[%s964_s3] ss:$0 sm:$0xff] (!%p224_p9) }
  0x14   : > { %v641_v34 = vpack.c.bf16 (!%p224_p9), %v376_v33, %v375_v32  ;;  %v549_v44 = vld [vmem:[%s966_s5] ss:$0 sm:$0xff] (!%p224_p9) }
  0x15   : > { %s849_s13 = scalar_select %p256_p10, %s814_s25, 1  ;;  %624 = vmatpush3.bf16.msra.mxu1 %v623_v13 }
  0x16   : > { %625 = vmatprep.subr.bf16.mxu1 %v754_v3  ;;  %s757_s25 = smov [#allocation2]  }
  0x17   : > { %s545_s14 = sshll.u32 %s849_s13, 3  ;;  %s693_s29 = sshll.u32 %s757_s25, 4  ;;  %s694_s29 = int_to_ptr.vmem [resolvable:$false] %s693_s29 }
  0x18   : > { %s259_s17 = scalar_lea.vmem %s961_s0, %s545_s14  ;;  %s263_s18 = scalar_lea.vmem %s962_s1, %s545_s14 }
  0x19   : > { %v265_v5 = vld [vmem:[%s259_s17] sm:$0xff]  ;;  %627 = vmatpush3.bf16.msra.mxu1 %v626_v16  ;;  %s469_s17 = sshll.u32 %s255_s16, 4  ;;  %s695_s14 = scalar_lea.vmem %s694_s29, 256  ;;  %s920_s17 = int_to_ptr.vmem [resolvable:$true] %s469_s17 }
  0x1a   : > { %vm266_vm0 = vcmp.eq.f32.partialorder %v265_v5, 0.0  ;;  %628 = vmatprep.subr.bf16.mxu1 %v754_v3  ;;  %v264_v17 = vld [vmem:[%s263_s18] sm:$0xff]  ;;  %s689_s28 = scalar_lea.vmem %s920_s17, 128  ;;  %p696_p0 = scmp.lt.s32.totalorder %s920_s17, %s694_s29 }
  0x1b   : > { %v267_v6 = vsel %vm266_vm0, 1, %v753_v2  ;;  %p690_p11 = scmp.ne.s32.totalorder %s920_s17, %s689_s28  ;;  %p697_p1 = scmp.lt.s32.totalorder %s695_s14, %s689_s28 }
  0x1c   : > { %269 = vperm.xlu0 %686, %v267_v6  }
  0x1d   : > { %630 = vmatpush3.bf16.msra.mxu1 %v629_v22  ;;  %p691_p12 = pnand %p690_p11, %p831_p5  ;;  %p698_p2 = por %p697_p1, %p696_p0 }
  0x1e   : > { %631 = vmatprep.subr.bf16.mxu1 %v754_v3 }
  0x1f   : > { %p692_p13 = pneg %p691_p12 }
  0x21   : > { %633 = vmatpush3.bf16.msra.mxu1 %v632_v25  ;;  %p699_p3 = pnand %p698_p2, %p692_p13 }
  0x22   : > { %634 = vmatprep.subr.bf16.mxu1 %v754_v3 }
  0x25   : > { %636 = vmatpush3.bf16.msra.mxu1 %v635_v28 }
  0x26   : > { %637 = vmatprep.subr.bf16.mxu1 %v754_v3 }
  0x29   : > { %639 = vmatpush3.bf16.msra.mxu1 %v638_v31 }
  0x2a   : > { %640 = vmatprep.subr.bf16.mxu1 %v754_v3 }
  0x2d   : > { %642 = vmatpush3.bf16.msra.mxu1 %v641_v34 }
  0x9b   : > { %v270_v18 = vpop.permute.xlu0 %269 }
  0x9c   : > { %vm271_vm3 = vcmp.eq.s32.totalorder %v270_v18, 1 }
  0x9d   : > { %v272_v19 = vsel %vm271_vm3, 0.0, %v264_v17 }
  0x9e   : > { %579 = vmatmul.mubr.msk.f32.vlgmr.msra.gmra.mrb[0].mxu0 %vm282_vm2, %v272_v19 }
 0x171   : > { %v352_v36 = vpop.f32.mrb[0].mxu0 }
 0x172   : > { %v353_v37 = vadd.f32 %v547_v35, %v352_v36  ;;  %v580_v38 = vpop.f32.mrb[1].mxu0 }
 0x174   : > { %v357_v39 = vmul.f32 0.70710677, %v353_v37  ;;  %v356_v41 = vmul.f32 0.5, %v353_v37 }
 0x176   : > { %687 = verf.f32 %v357_v39 }
 0x180   : > { %v688_v40 = vpop.eup %687 }
 0x181   : > { %v359_v42 = vadd.f32 1.0, %v688_v40 }
 0x183   : > { %v360_v43 = vmul.f32 %v359_v42, %v356_v41 }
 0x185   : > { %614 = vmatmul.mubr.f32.vlgmr.msra.gmra.mrb[0].mxu1 %v360_v43 }
 0x258   : > { %v450_v45 = vpop.f32.mrb[0].mxu1 }
 0x259   : > { %v451_v46 = vadd.f32 %v549_v44, %v450_v45  ;;  %v615_v47 = vpop.f32.mrb[1].mxu1 }
 0x25b   : > { %454 = vst.msk [vmem:[%s255_s16] sm:$0xff] %vm282_vm2, %v451_v46 }
 0x25c   : > { %702 = shalt.err (!%p699_p3)
}
 0x25d   : > { %s703_s9 = scalar_lea.hbm %s918_s20, 128  ;;  %s707_s12 = scalar_lea.hbm %s967_s6, 256 }
 0x25e   : > { %p704_p4 = scmp.ne.s32.totalorder %s918_s20, %s703_s9  ;;  %p708_p9 = scmp.lt.u32.totalorder %s918_s20, %s967_s6 }
 0x25f   : > { %p709_p10 = scmp.lt.u32.totalorder %s707_s12, %s703_s9  ;;  %p711_p12 = scmp.lt.u32.totalorder %s703_s9, %s918_s20 }
 0x260   : > { %p705_p7 = pnand %p704_p4, %p831_p5 }
 0x261   : > { %p710_p11 = por %p709_p10, %p708_p9 }
 0x262   : > { %p706_p8 = pneg %p705_p7 }
 0x263   : > { %p712_p13 = por %p711_p12, %p710_p11 }
 0x265   : > { %p713_p0 = pnand %p712_p13, %p706_p8 }
 0x267   : > { %716 = shalt.err (!%p713_p0)
}
 0x268   : > { %643 = dma.vmem_to_hbm [thread:$0]  (%p831_p5), %s920_s17, 128, %s918_s20, %s456_s26  }
 0x269 PF: > { %p649_p1 = scmp.ge.s32.totalorder %s751_s24, 2  ;;  %s481_s16 = sand.u32 1, %s739_s21  }
 0x26a   : > { %s482_s18 = scalar_lea.sflag [#allocation3], %s481_s16 }
 0x26b   : > { %p646_p2 = pnand %p649_p1, %p835_p6 }
 0x26d   : > { %734 = dma.done.wait (!%p646_p2), %s482_s18, 128  }
 0x26e   : > { %736 = vsyncadd (!%p646_p2), %s482_s18, 4294967168  ;;  %p16_p3 = scmp.ge.s32.totalorder %s818_s27, 4   ;;  %s970_s21 = smov %s743_s22 }
 0x26f   : > { %s971_s22 = smov %s747_s23  ;;  %s972_s23 = smov %s829_s30 }
 0x270   : > { %s973_s24 = smov %s818_s27  ;;  %18 = sbr.rel (!%p16_p3) target bundleno = 3 (0x3), region = 82 }
 0x277   :  { %487 = vsyncpa [#allocation3], 1 }
 0x278   :  { %489 = vsyncpa [#allocation3 + $0x1], 1 }

</bundles_post_ra>
